<compile_context>
chip_gen: v6e
topology: v6e:2x2x1
jax: 0.10.0
libtpu: 0.0.40
codegen_flags: <defaults>
</compile_context>

<pallas_src>
import functools

import jax
import jax.numpy as jnp
from jax.experimental import pallas as pl
from jax.experimental.pallas import tpu as pltpu


_LANE = 128                       # lane width of a vreg / VMEM tile
_MAX_INPUT_TILE_BYTES = 8 << 20   # per-input tile cap (f32-equivalent bytes)


def _round_up(x, m):
    return ((x + m - 1) // m) * m


@functools.lru_cache(maxsize=None)
def _vmem_capacity_bytes():
    """Physical VMEM of the attached TPU (per TensorCore), with fallbacks."""
    try:
        cap = int(pltpu.get_tpu_info().vmem_capacity_bytes)
        if cap > 0:
            return cap
    except Exception:
        pass
    try:
        kind = jax.devices()[0].device_kind.lower()
    except Exception:
        kind = ""
    if "7" in kind:               # v7x: 64 MiB per TensorCore
        return 64 << 20
    return 128 << 20              # v4 / v5e / v5p / v6e


@functools.lru_cache(maxsize=None)
def _vmem_limit_bytes():
    # ~96 MiB on 128-MiB parts, ~48 MiB on v7x; leaves compiler headroom.
    return (_vmem_capacity_bytes() * 3) // 4


@functools.lru_cache(maxsize=None)
def _num_tensorcores():
    """1 on single-TC chips (v2/v3/v5e/v6e), 2 on megacore/dual-TC chips."""
    try:
        kind = jax.devices()[0].device_kind.lower().replace(" ", "")
    except Exception:
        return 1
    if "lite" in kind:            # "TPU v5 lite" / "TPU v6 lite"
        return 1
    if any(tag in kind for tag in ("v4", "v5p", "v7", "7x")):
        return 2
    return 1


def _dim_semantics_candidates(num_splits):
    if num_splits <= 1:
        return [("arbitrary", "arbitrary")]
    cands = []
    core_par = getattr(pltpu, "CORE_PARALLEL", None)
    arb = getattr(pltpu, "ARBITRARY", None)
    if core_par is not None and arb is not None:
        cands.append((core_par, arb))        # guaranteed cross-TC sharding
    cands.append(("parallel", "arbitrary"))  # classic megacore sharding
    cands.append(("arbitrary", "arbitrary"))
    return cands


def _choose_row_tile(rows, cols, itemsizes, vmem_limit, small_acc):
    """Largest multiple-of-8 row tile whose *real* VMEM footprint fits."""
    cols_p = _round_up(cols, _LANE)          # VMEM blocks are lane-padded
    budget = (vmem_limit * 4) // 5           # headroom under the scoped limit
    # Double-buffered input tiles (true dtype itemsize) plus ~3 f32 tiles'
    # worth of Mosaic temporaries (upcast, square, slack).
    per_row = 2 * cols_p * sum(int(s) for s in itemsizes) + 3 * cols_p * 4
    if small_acc:
        budget -= 8 * cols_p * 4             # tiny (8, cols) accumulator
    else:
        per_row += cols_p * 4                # full (tm, cols) f32 accumulator
    tm = budget // max(1, per_row)
    # Cap: a few-MiB tile is already >=85% of HBM roofline; huge blocks only
    # blow up Mosaic temporaries / compile time.
    tm = min(tm, _MAX_INPUT_TILE_BYTES // (cols_p * 4))
    tm = max(8, (tm // 8) * 8)
    tm = min(tm, _round_up(rows, 8))
    return tm


def _fro_sumsq_kernel(*refs, rows, tm, cols, num_tiles, tiles_per_split,
                      num_factors, mask_tail, has_overhang, small_acc):
    x_refs = refs[:num_factors]
    o_ref = refs[num_factors]
    acc_ref = refs[num_factors + 1]

    c = pl.program_id(0)                     # row-tile half (TensorCore split)
    i = pl.program_id(1)                     # reduction over row tiles
    tile = c * tiles_per_split + i           # logical (unclamped) tile index

    @pl.when(i == 0)
    def _():
        acc_ref[...] = jnp.zeros_like(acc_ref)

    def accumulate(masked):
        if masked:
            ridx = tile * tm + jax.lax.broadcasted_iota(jnp.int32, (tm, 1), 0)
            valid = ridx < rows              # (tm, 1); broadcasts over lanes
        part = acc_ref[...]
        for x_ref in x_refs:
            x = x_ref[...].astype(jnp.float32)
            if masked:
                x = jnp.where(valid, x, 0.0)
            x2 = x * x                       # pure VPU elementwise
            if small_acc:
                # Collapse sublane groups into the tiny (8, cols) accumulator:
                # same VALU add count, no multi-MiB acc load/store per step.
                part = part + jnp.sum(x2.reshape(tm // 8, 8, cols), axis=0)
            else:
                part = part + x2
        acc_ref[...] = part

    if mask_tail:
        @pl.when(tile < num_tiles - 1)       # unmasked fast path (interior)
        def _():
            accumulate(masked=False)

        @pl.when(tile == num_tiles - 1)      # single partial tail tile
        def _():
            accumulate(masked=True)
    elif has_overhang:
        @pl.when(tile < num_tiles)           # skip clamped re-read tiles
        def _():
            accumulate(masked=False)
    else:
        accumulate(masked=False)

    @pl.when(i == tiles_per_split - 1)
    def _():
        # Single expensive cross-lane/sublane collapse per split.
        o_ref[...] = jnp.sum(acc_ref[...], keepdims=True)


def _sum_of_squares_group(views):
    """Total sum of squares over same-shaped 2-D views (one pallas_call)."""
    rows, cols = views[0].shape
    num_factors = len(views)
    small_acc = (cols % _LANE) == 0          # lane-dense layout
    vmem_limit = _vmem_limit_bytes()
    tm = _choose_row_tile(rows, cols, [v.dtype.itemsize for v in views],
                          vmem_limit, small_acc)
    num_tiles = pl.cdiv(rows, tm)
    num_splits = max(1, min(_num_tensorcores(), num_tiles))
    tiles_per_split = pl.cdiv(num_tiles, num_splits)
    mask_tail = (rows % tm) != 0
    has_overhang = num_splits * tiles_per_split > num_tiles

    if has_overhang:
        def in_index_map(c, i):
            # Clamp the overhang DMA; the kernel skips its compute entirely.
            return (jnp.minimum(c * tiles_per_split + i, num_tiles - 1), 0)
    else:
        def in_index_map(c, i):
            return (c * tiles_per_split + i, 0)

    kernel = functools.partial(
        _fro_sumsq_kernel, rows=rows, tm=tm, cols=cols, num_tiles=num_tiles,
        tiles_per_split=tiles_per_split, num_factors=num_factors,
        mask_tail=mask_tail, has_overhang=has_overhang, small_acc=small_acc)

    acc_shape = (8, cols) if small_acc else (tm, cols)
    total_bytes = sum(v.size * v.dtype.itemsize for v in views)

    def run(dim_sems):
        return pl.pallas_call(
            kernel,
            out_shape=jax.ShapeDtypeStruct((num_splits, 1), jnp.float32),
            grid_spec=pltpu.PrefetchScalarGridSpec(
                num_scalar_prefetch=0,
                grid=(num_splits, tiles_per_split),
                in_specs=[pl.BlockSpec((tm, cols), in_index_map)
                          for _ in views],
                out_specs=pl.BlockSpec((1, 1), lambda c, i: (c, 0)),
                scratch_shapes=[pltpu.VMEM(acc_shape, jnp.float32)],
            ),
            compiler_params=pltpu.CompilerParams(
                dimension_semantics=dim_sems,
                vmem_limit_bytes=vmem_limit,
            ),
            cost_estimate=pl.CostEstimate(
                flops=2 * sum(v.size for v in views),
                transcendentals=0,
                bytes_accessed=total_bytes + num_splits * 4,
            ),
        )(*views)

    last_err = None
    for dim_sems in _dim_semantics_candidates(num_splits):
        try:
            partials = run(tuple(dim_sems))
            return jnp.sum(partials)
        except Exception as err:   # e.g. CORE_PARALLEL unsupported -> fallback
            last_err = err
    raise last_err


def _lane_dense_view(f):
    """(size // 128, 128) bitcast view when possible, else a 2-D view."""
    size = f.size
    if size % _LANE == 0:
        return f.reshape(size // _LANE, _LANE)
    return f.reshape(-1, f.shape[-1])


def fro(factors, weight: float):
    """JAX/Pallas equivalent of Fro(weight)(factors)."""
    factors = list(factors)
    views = [_lane_dense_view(f) for f in factors]
    groups = {}
    for v in views:                            # fuse same-shaped views
        groups.setdefault(v.shape, []).append(v)
    total = jnp.float32(0.0)
    for group in groups.values():
        total = total + _sum_of_squares_group(group)
    # factors[0][0].shape[0] in the PyTorch module == factors[0].shape[1]
    # (length of the first row), independent of how the factor is interpreted.
    denom = factors[0].shape[1]
    return (jnp.float32(weight) * total) / jnp.float32(denom)


def fro_ref(factors, weight: float):
    norm = jnp.float32(0.0)
    for factor in factors:
        norm = norm + jnp.float32(weight) * jnp.sum(
            jnp.square(factor.astype(jnp.float32)))
    return norm / jnp.float32(factors[0].shape[1])


if __name__ == "__main__":
    weight = 0.01
    key = jax.random.PRNGKey(0)
    k1, k2, k3, k4, k5 = jax.random.split(key, 5)

    # 1) Same-shape factors -> single fused pallas_call on the lane-dense
    #    (size // 128, 128) view; rows=3 < tile=8 exercises tail masking.
    factors = [
        jax.random.normal(k1, (12, 32), dtype=jnp.float32),
        jax.random.normal(k2, (12, 32), dtype=jnp.float32),
        jax.random.normal(k3, (12, 32), dtype=jnp.float32),
    ]
    out = jax.block_until_ready(fro(factors, weight))
    ref = fro_ref(factors, weight)
    assert jnp.allclose(out, ref, rtol=1e-5, atol=1e-6), (out, ref)

    # 2) Mixed shapes / dtypes -> one call per shape group.  bf16 is DMA'd as
    #    bf16 and upcast in-kernel; (9, 20) has 180 elements (not a multiple
    #    of 128) and exercises the non-lane-dense fallback with row masking.
    mixed = [
        jax.random.normal(k1, (12, 32), dtype=jnp.float32),
        jax.random.normal(k4, (20, 32), dtype=jnp.bfloat16),
        jax.random.normal(k5, (9, 20), dtype=jnp.float32),
    ]
    out2 = jax.block_until_ready(fro(mixed, weight))
    ref2 = fro_ref(mixed, weight)
    assert jnp.allclose(out2, ref2, rtol=1e-3, atol=1e-3), (out2, ref2)

    print("KERNEL_OK")
</pallas_src>

<mosaic_0001>
module attributes {stable_mosaic.version = 11 : i64} {
  func.func @_fro_sumsq_kernel(%arg0: i32, %arg1: i32, %arg2: memref<8x128xf32, #tpu.memory_space<vmem>>, %arg3: memref<8x128xf32, #tpu.memory_space<vmem>>, %arg4: memref<8x128xf32, #tpu.memory_space<vmem>>, %arg5: memref<1x1xf32, #tpu.memory_space<vmem>>, %arg6: memref<8x128xf32, #tpu.memory_space<vmem>>) attributes {dimension_semantics = [#tpu.dimension_semantics<arbitrary>, #tpu.dimension_semantics<arbitrary>], iteration_bounds = array<i64: 1, 1>, scalar_prefetch = 0 : i64, scratch_operands = 1 : i64, tpu.core_type = #tpu.core_type<tc>, window_params = [{transform_indices = @transform_0, window_bounds = array<i64: 8, 128>}, {transform_indices = @transform_1, window_bounds = array<i64: 8, 128>}, {transform_indices = @transform_2, window_bounds = array<i64: 8, 128>}, {transform_indices = @transform_3, window_bounds = array<i64: 1, 1>}]} {
    %c1_i32 = arith.constant 1 : i32
    %0 = arith.muli %arg0, %c1_i32 : i32
    %1 = arith.addi %0, %arg1 : i32
    %c0_i32 = arith.constant 0 : i32
    %2 = arith.cmpi eq, %arg1, %c0_i32 : i32
    %3 = arith.extui %2 : i1 to i32
    %c0_i32_0 = arith.constant 0 : i32
    %4 = arith.cmpi ne, %3, %c0_i32_0 : i32
    scf.if %4 {
      %cst = arith.constant 0.000000e+00 : f32
      %14 = vector.broadcast %cst : f32 to vector<8x128xf32>
      %c0 = arith.constant 0 : index
      %c0_7 = arith.constant 0 : index
      %15 = vector.load %arg6[%c0, %c0_7] : memref<8x128xf32, #tpu.memory_space<vmem>>, vector<8x128xf32>
      tpu.vector_store %arg6[%c0, %c0_7], %14 {strides = array<i32>} : memref<8x128xf32, #tpu.memory_space<vmem>>, vector<8x128xf32>,
    } else {
    }
    %c0_i32_1 = arith.constant 0 : i32
    %5 = arith.cmpi slt, %1, %c0_i32_1 : i32
    %6 = arith.extui %5 : i1 to i32
    %c0_i32_2 = arith.constant 0 : i32
    %7 = arith.cmpi ne, %6, %c0_i32_2 : i32
    scf.if %7 {
      %c0 = arith.constant 0 : index
      %c0_7 = arith.constant 0 : index
      %14 = vector.load %arg6[%c0, %c0_7] : memref<8x128xf32, #tpu.memory_space<vmem>>, vector<8x128xf32>
      %c0_8 = arith.constant 0 : index
      %c0_9 = arith.constant 0 : index
      %15 = vector.load %arg2[%c0_8, %c0_9] : memref<8x128xf32, #tpu.memory_space<vmem>>, vector<8x128xf32>
      %16 = arith.mulf %15, %15 : vector<8x128xf32>
      %17 = vector.shape_cast %16 : vector<8x128xf32> to vector<1x8x128xf32>
      %cst = arith.constant dense<0.000000e+00> : vector<8x128xf32>
      %18 = vector.multi_reduction <add>, %17, %cst [0] : vector<1x8x128xf32> to vector<8x128xf32>
      %19 = arith.addf %14, %18 : vector<8x128xf32>
      %c0_10 = arith.constant 0 : index
      %c0_11 = arith.constant 0 : index
      %20 = vector.load %arg3[%c0_10, %c0_11] : memref<8x128xf32, #tpu.memory_space<vmem>>, vector<8x128xf32>
      %21 = arith.mulf %20, %20 : vector<8x128xf32>
      %22 = vector.shape_cast %21 : vector<8x128xf32> to vector<1x8x128xf32>
      %cst_12 = arith.constant dense<0.000000e+00> : vector<8x128xf32>
      %23 = vector.multi_reduction <add>, %22, %cst_12 [0] : vector<1x8x128xf32> to vector<8x128xf32>
      %24 = arith.addf %19, %23 : vector<8x128xf32>
      %c0_13 = arith.constant 0 : index
      %c0_14 = arith.constant 0 : index
      %25 = vector.load %arg4[%c0_13, %c0_14] : memref<8x128xf32, #tpu.memory_space<vmem>>, vector<8x128xf32>
      %26 = arith.mulf %25, %25 : vector<8x128xf32>
      %27 = vector.shape_cast %26 : vector<8x128xf32> to vector<1x8x128xf32>
      %cst_15 = arith.constant dense<0.000000e+00> : vector<8x128xf32>
      %28 = vector.multi_reduction <add>, %27, %cst_15 [0] : vector<1x8x128xf32> to vector<8x128xf32>
      %29 = arith.addf %24, %28 : vector<8x128xf32>
      %c0_16 = arith.constant 0 : index
      %c0_17 = arith.constant 0 : index
      %30 = vector.load %arg6[%c0_16, %c0_17] : memref<8x128xf32, #tpu.memory_space<vmem>>, vector<8x128xf32>
      tpu.vector_store %arg6[%c0_16, %c0_17], %29 {strides = array<i32>} : memref<8x128xf32, #tpu.memory_space<vmem>>, vector<8x128xf32>,
    } else {
    }
    %c0_i32_3 = arith.constant 0 : i32
    %8 = arith.cmpi eq, %1, %c0_i32_3 : i32
    %9 = arith.extui %8 : i1 to i32
    %c0_i32_4 = arith.constant 0 : i32
    %10 = arith.cmpi ne, %9, %c0_i32_4 : i32
    scf.if %10 {
      %c8_i32 = arith.constant 8 : i32
      %14 = arith.muli %1, %c8_i32 : i32
      %15 = tpu.iota {dimensions = array<i32: 0>} : vector<8x1xi32>
      %16 = vector.broadcast %14 : i32 to vector<8x1xi32>
      %17 = arith.addi %16, %15 : vector<8x1xi32>
      %c3_i32 = arith.constant 3 : i32
      %18 = vector.broadcast %c3_i32 : i32 to vector<8x1xi32>
      %19 = arith.cmpi slt, %17, %18 : vector<8x1xi32>
      %c0 = arith.constant 0 : index
      %c0_7 = arith.constant 0 : index
      %20 = vector.load %arg6[%c0, %c0_7] : memref<8x128xf32, #tpu.memory_space<vmem>>, vector<8x128xf32>
      %c0_8 = arith.constant 0 : index
      %c0_9 = arith.constant 0 : index
      %21 = vector.load %arg2[%c0_8, %c0_9] : memref<8x128xf32, #tpu.memory_space<vmem>>, vector<8x128xf32>
      %cst = arith.constant 0.000000e+00 : f32
      %22 = vector.shape_cast %19 : vector<8x1xi1> to vector<8x1xi1>
      %23 = vector.broadcast %22 : vector<8x1xi1> to vector<8x128xi1>
      %24 = vector.broadcast %cst : f32 to vector<8x128xf32>
      %25 = arith.select %23, %21, %24 : vector<8x128xi1>, vector<8x128xf32>
      %26 = arith.mulf %25, %25 : vector<8x128xf32>
      %27 = vector.shape_cast %26 : vector<8x128xf32> to vector<1x8x128xf32>
      %cst_10 = arith.constant dense<0.000000e+00> : vector<8x128xf32>
      %28 = vector.multi_reduction <add>, %27, %cst_10 [0] : vector<1x8x128xf32> to vector<8x128xf32>
      %29 = arith.addf %20, %28 : vector<8x128xf32>
      %c0_11 = arith.constant 0 : index
      %c0_12 = arith.constant 0 : index
      %30 = vector.load %arg3[%c0_11, %c0_12] : memref<8x128xf32, #tpu.memory_space<vmem>>, vector<8x128xf32>
      %cst_13 = arith.constant 0.000000e+00 : f32
      %31 = vector.shape_cast %19 : vector<8x1xi1> to vector<8x1xi1>
      %32 = vector.broadcast %31 : vector<8x1xi1> to vector<8x128xi1>
      %33 = vector.broadcast %cst_13 : f32 to vector<8x128xf32>
      %34 = arith.select %32, %30, %33 : vector<8x128xi1>, vector<8x128xf32>
      %35 = arith.mulf %34, %34 : vector<8x128xf32>
      %36 = vector.shape_cast %35 : vector<8x128xf32> to vector<1x8x128xf32>
      %cst_14 = arith.constant dense<0.000000e+00> : vector<8x128xf32>
      %37 = vector.multi_reduction <add>, %36, %cst_14 [0] : vector<1x8x128xf32> to vector<8x128xf32>
      %38 = arith.addf %29, %37 : vector<8x128xf32>
      %c0_15 = arith.constant 0 : index
      %c0_16 = arith.constant 0 : index
      %39 = vector.load %arg4[%c0_15, %c0_16] : memref<8x128xf32, #tpu.memory_space<vmem>>, vector<8x128xf32>
      %cst_17 = arith.constant 0.000000e+00 : f32
      %40 = vector.shape_cast %19 : vector<8x1xi1> to vector<8x1xi1>
      %41 = vector.broadcast %40 : vector<8x1xi1> to vector<8x128xi1>
      %42 = vector.broadcast %cst_17 : f32 to vector<8x128xf32>
      %43 = arith.select %41, %39, %42 : vector<8x128xi1>, vector<8x128xf32>
      %44 = arith.mulf %43, %43 : vector<8x128xf32>
      %45 = vector.shape_cast %44 : vector<8x128xf32> to vector<1x8x128xf32>
      %cst_18 = arith.constant dense<0.000000e+00> : vector<8x128xf32>
      %46 = vector.multi_reduction <add>, %45, %cst_18 [0] : vector<1x8x128xf32> to vector<8x128xf32>
      %47 = arith.addf %38, %46 : vector<8x128xf32>
      %c0_19 = arith.constant 0 : index
      %c0_20 = arith.constant 0 : index
      %48 = vector.load %arg6[%c0_19, %c0_20] : memref<8x128xf32, #tpu.memory_space<vmem>>, vector<8x128xf32>
      tpu.vector_store %arg6[%c0_19, %c0_20], %47 {strides = array<i32>} : memref<8x128xf32, #tpu.memory_space<vmem>>, vector<8x128xf32>,
    } else {
    }
    %c0_i32_5 = arith.constant 0 : i32
    %11 = arith.cmpi eq, %arg1, %c0_i32_5 : i32
    %12 = arith.extui %11 : i1 to i32
    %c0_i32_6 = arith.constant 0 : i32
    %13 = arith.cmpi ne, %12, %c0_i32_6 : i32
    scf.if %13 {
      %c0 = arith.constant 0 : index
      %c0_7 = arith.constant 0 : index
      %14 = vector.load %arg6[%c0, %c0_7] : memref<8x128xf32, #tpu.memory_space<vmem>>, vector<8x128xf32>
      %15 = vector.shape_cast %14 : vector<8x128xf32> to vector<1x8x128xf32>
      %cst = arith.constant dense<0.000000e+00> : vector<1xf32>
      %16 = vector.multi_reduction <add>, %15, %cst [1, 2] : vector<1x8x128xf32> to vector<1xf32>
      %17 = vector.shape_cast %16 : vector<1xf32> to vector<1x1x1xf32>
      %18 = vector.extract %17[0, 0, 0] : f32 from vector<1x1x1xf32>
      %19 = vector.broadcast %18 : f32 to vector<1x1xf32>
      %c0_8 = arith.constant 0 : index
      %c0_9 = arith.constant 0 : index
      %20 = vector.load %arg5[%c0_8, %c0_9] : memref<1x1xf32, #tpu.memory_space<vmem>>, vector<1x1xf32>
      tpu.vector_store %arg5[%c0_8, %c0_9], %19 {strides = array<i32>} : memref<1x1xf32, #tpu.memory_space<vmem>>, vector<1x1xf32>,
    } else {
    }
    return
  }
  func.func @transform_0(%arg0: i32, %arg1: i32) -> (i32, i32) {
    %c1_i32 = arith.constant 1 : i32
    %0 = arith.muli %arg0, %c1_i32 : i32
    %1 = arith.addi %0, %arg1 : i32
    %c0_i32 = arith.constant 0 : i32
    %c0_i32_0 = arith.constant 0 : i32
    return %1, %c0_i32 : i32, i32
  }
  func.func @transform_1(%arg0: i32, %arg1: i32) -> (i32, i32) {
    %c1_i32 = arith.constant 1 : i32
    %0 = arith.muli %arg0, %c1_i32 : i32
    %1 = arith.addi %0, %arg1 : i32
    %c0_i32 = arith.constant 0 : i32
    %c0_i32_0 = arith.constant 0 : i32
    return %1, %c0_i32 : i32, i32
  }
  func.func @transform_2(%arg0: i32, %arg1: i32) -> (i32, i32) {
    %c1_i32 = arith.constant 1 : i32
    %0 = arith.muli %arg0, %c1_i32 : i32
    %1 = arith.addi %0, %arg1 : i32
    %c0_i32 = arith.constant 0 : i32
    %c0_i32_0 = arith.constant 0 : i32
    return %1, %c0_i32 : i32, i32
  }
  func.func @transform_3(%arg0: i32, %arg1: i32) -> (i32, i32) {
    %c0_i32 = arith.constant 0 : i32
    %c0_i32_0 = arith.constant 0 : i32
    return %arg0, %c0_i32 : i32, i32
  }
}

</mosaic_0001>

<bundles_post_ra>
// kernel: tpu_custom_call.1
= control target key start
LH: loop header
LB: loop body
LE: loop exit
PB: predicated region body
PF: predicated region fallthrough
CT: control target
= control target key end

     0   :  { %8 = vsyncpa [#allocation4], 0  ;;  %s318_s0 = inlined_call_operand.hbm [shape: f32[3,128], index: 0, kind: input, shape index: {}]   ;;  %s319_s1 = inlined_call_operand.hbm [shape: f32[3,128], index: 1, kind: input, shape index: {}]   ;;  %s320_s2 = inlined_call_operand.hbm [shape: f32[3,128], index: 2, kind: input, shape index: {}]   ;;  %s321_s3 = inlined_call_operand.hbm [shape: f32[1,1], index: 3, kind: output, shape index: {}]  }
   0x1   :  { %9 = vsyncpa [#allocation7], 0 }
   0x2   :  { %10 = vsyncpa [#allocation5], 0 }
   0x3   :  { %19 = vsyncadd [#allocation4], 64  ;;  %s271_s12 = smov [#allocation3]  }
   0x4   :  { %s24_s13 = sshll.u32 %s271_s12, 4  ;;  %s25_s13 = int_to_ptr.vmem [resolvable:$true] %s24_s13 }
   0x5   :  { %s193_s14 = scalar_lea.vmem %s25_s13, 64  ;;  %s197_s15 = scalar_lea.vmem %s25_s13, 128 }
   0x6   :  { %p194_p0 = scmp.ne.s32.totalorder %s25_s13, %s193_s14  ;;  %p198_p1 = scmp.lt.s32.totalorder %s25_s13, %s25_s13 }
   0x7   :  { %p199_p2 = scmp.lt.s32.totalorder %s197_s15, %s193_s14 }
   0x9   :  { %p200_p3 = por %p199_p2, %p198_p1 }
   0xb   :  { %p201_p4 = pnand %p200_p3, %p194_p0 }
   0xd   :  { %204 = shalt.err (!%p201_p4)
}
   0xe   :  { %s272_s16 = smov 64   ;;  %s273_s17 = smov 4  }
   0xf   :  { %30 = dma.hbm_to_vmem [thread:$0]  %s318_s0, 64, %s25_s13, [#allocation4], %s272_s16, %s272_s16, %s273_s17  }
  0x10   :  { %39 = vsyncadd [#allocation7], 64  ;;  %s274_s20 = smov [#allocation6]  }
  0x11   :  { %s44_s21 = sshll.u32 %s274_s20, 4  ;;  %s45_s21 = int_to_ptr.vmem [resolvable:$true] %s44_s21 }
  0x12   :  { %s213_s22 = scalar_lea.vmem %s45_s21, 64  ;;  %s217_s23 = scalar_lea.vmem %s45_s21, 128 }
  0x13   :  { %p214_p5 = scmp.ne.s32.totalorder %s45_s21, %s213_s22  ;;  %p218_p6 = scmp.lt.s32.totalorder %s45_s21, %s45_s21 }
  0x14   :  { %p219_p7 = scmp.lt.s32.totalorder %s217_s23, %s213_s22 }
  0x16   :  { %p220_p8 = por %p219_p7, %p218_p6 }
  0x18   :  { %p221_p9 = pnand %p220_p8, %p214_p5 }
  0x1a   :  { %224 = shalt.err (!%p221_p9)
}
  0x1b   :  { %50 = dma.hbm_to_vmem [thread:$0]  %s319_s1, 64, %s45_s21, [#allocation7], %s272_s16, %s272_s16, %s273_s17  }
  0x1c   :  { %59 = vsyncadd [#allocation7], 64  ;;  %s275_s0 = smov [#allocation8]  }
  0x1d   :  { %s64_s26 = sshll.u32 %s275_s0, 4  ;;  %s65_s26 = int_to_ptr.vmem [resolvable:$true] %s64_s26 }
  0x1e   :  { %s233_s27 = scalar_lea.vmem %s65_s26, 64  ;;  %s237_s28 = scalar_lea.vmem %s65_s26, 128 }
  0x1f   :  { %p234_p10 = scmp.ne.s32.totalorder %s65_s26, %s233_s27  ;;  %p238_p11 = scmp.lt.s32.totalorder %s65_s26, %s65_s26 }
  0x20   :  { %p239_p12 = scmp.lt.s32.totalorder %s237_s28, %s233_s27 }
  0x22   :  { %p240_p13 = por %p239_p12, %p238_p11 }
  0x24   :  { %p241_p0 = pnand %p240_p13, %p234_p10 }
  0x26   :  { %244 = shalt.err (!%p241_p0)
}
  0x27   :  { %70 = dma.hbm_to_vmem [thread:$0]  %s320_s2, 64, %s65_s26, [#allocation7], %s272_s16, %s272_s16, %s273_s17  }
  0x28   :  { %265 = dma.done.wait [#allocation4], 128  }
  0x29   :  { %266 = vsyncadd [#allocation4], 4294967168 }
  0x2a   :  { %267 = dma.done.wait [#allocation7], 256  }
  0x2b   :  { %268 = vsyncadd [#allocation7], 4294967040  ;;  %v121_v0 = vlaneseq  ;;  %v127_v2 = vld [vmem:[#allocation3] sm:$0xff]  ;;  %v134_v3 = vld [vmem:[#allocation6] sm:$0xff]  ;;  %s276_s1 = smov [#allocation9]   ;;  %vm159_vm1 = vcmask 0  }
  0x2c   :  { %v139_v4 = vld [vmem:[#allocation8] sm:$0xff]  ;;  %s167_s2 = sshll.u32 %s276_s1, 4  ;;  %s168_s2 = int_to_ptr.vmem [resolvable:$true] %s167_s2 }
  0x2d   :  { %v122_v1 = vshrl.u32 %v121_v0, 7  ;;  %s245_s5 = scalar_lea.vmem %s168_s2, 16  ;;  %s249_s6 = scalar_lea.vmem %s168_s2, 32 }
  0x2e   :  { %p246_p1 = scmp.ne.s32.totalorder %s168_s2, %s245_s5  ;;  %p250_p2 = scmp.lt.s32.totalorder %s168_s2, %s168_s2 }
  0x2f   :  { %vm125_vm0 = vcmp.lt.s32.totalorder %v122_v1, 3  ;;  %p251_p3 = scmp.lt.s32.totalorder %s249_s6, %s245_s5 }
  0x30   :  { %v130_v5 = vsel %vm125_vm0, %v127_v2, 0.0  ;;  %v135_v6 = vsel %vm125_vm0, %v134_v3, 0.0  ;;  %v140_v7 = vsel %vm125_vm0, %v139_v4, 0.0 }
  0x31   :  { %v131_v8 = vmul.f32 %v130_v5, %v130_v5  ;;  %v136_v9 = vmul.f32 %v135_v6, %v135_v6  ;;  %v141_v10 = vmul.f32 %v140_v7, %v140_v7  ;;  %p252_p4 = por %p251_p3, %p250_p2 }
  0x33   :  { %v138_v11 = vadd.f32 %v136_v9, %v131_v8  ;;  %p253_p5 = pnand %p252_p4, %p246_p1 }
  0x35   :  { %v143_v12 = vadd.f32 %v141_v10, %v138_v11 }
  0x37   :  { %149 = vadd.xlane.f32.xlu0 %v143_v12 }
  0xc0   :  { %v150_v13 = vpop.xlane.xlu0 %149 }
  0xc1   :  { %v151_v14 = vrot.slane %v150_v13, 4 }
  0xc3   :  { %v152_v15 = vadd.f32 %v151_v14, %v150_v13 }
  0xc5   :  { %v153_v16 = vrot.slane %v152_v15, 2 }
  0xc7   :  { %v154_v17 = vadd.f32 %v153_v16, %v152_v15 }
  0xc9   :  { %v155_v18 = vrot.slane %v154_v17, 1 }
  0xcb   :  { %v156_v19 = vadd.f32 %v155_v18, %v154_v17 }
  0xcd   :  { %177 = vpush %v156_v19 }
  0xfe   :  { %s178_s4 = spop %177 }
  0xff   :  { %v158_v20 = vstv %s178_s4 }
 0x100   :  { %160 = vst.msk [vmem:[#allocation9] sm:$0x1] %vm159_vm1, %v158_v20 }
 0x101   :  { %256 = shalt.err (!%p253_p5)
}
 0x102   :  { %170 = dma.vmem_to_hbm [thread:$0]  %s168_s2, 16, %s321_s3, [#allocation5]  }
 0x103   :  { %269 = dma.done.wait [#allocation5], 16  }
 0x104   :  { %270 = vsyncadd [#allocation5], 4294967280 }
 0x105   :  { %174 = vsyncpa [#allocation4], 1 }
 0x106   :  { %175 = vsyncpa [#allocation7], 1 }
 0x107   :  { %176 = vsyncpa [#allocation5], 1 }

</bundles_post_ra>
